<compile_context>
chip_gen: v5e
topology: v5e:2x2
jax: 0.10.0
libtpu: 0.0.40
codegen_flags: <defaults>
</compile_context>

<pallas_src>
import functools
import math

import jax
import jax.numpy as jnp
from jax import lax
from jax.experimental import pallas as pl
from jax.experimental.pallas import tpu as pltpu

_LANE = 128
_SUBLANE = 8
_CHUNK_ROWS_MAX = 1024  # caps in-kernel f32 temporaries at 512 KiB per operand


def _device_defaults():
    """(tile_rows, vmem_limit_bytes, num_core_splits) per TPU generation."""
    kind = ""
    try:
        kind = jax.devices()[0].device_kind.lower()
    except Exception:
        pass
    mib = 1024 * 1024
    if "v5" in kind:       # v5e: ~820 GB/s; default scoped VMEM is only 16 MiB
        return 4096, 32 * mib, 1
    if "v6" in kind:       # v6e: 1 TC, 128 MiB physical VMEM
        return 8192, 64 * mib, 1
    if "7" in kind:        # v7x: 2 TCs, 64 MiB VMEM per TC, ~3.2 TB/s per TC
        return 8192, 48 * mib, 2
    return 4096, 32 * mib, 1


def _content_loss_kernel(x_ref, t_ref, part_ref, *, steps_per_split, tile_rows,
                         chunk_rows, valid_rows, apply_mask):
    c = pl.program_id(0)   # core split      ("parallel")
    i = pl.program_id(1)   # reduction step  ("arbitrary")

    @pl.when(i == 0)
    def _():
        part_ref[...] = jnp.zeros_like(part_ref)

    # NOTE: row_block intentionally uses the UN-clamped block index while the
    # input index_map clamps to n_blocks-1, so clamped duplicate blocks (read
    # past the end by the last split) are fully masked to zero.  Do NOT
    # "simplify" this to a clamped index or duplicates get double-counted.
    row_block = c * steps_per_split + i

    def accumulate(masked):
        # Walk the tile in chunk_rows slices: bounds the f32 temporaries and
        # fuses sub/mul/accumulate instead of materializing full-tile values.
        for j in range(tile_rows // chunk_rows):
            xv = x_ref[pl.ds(j * chunk_rows, chunk_rows), :].astype(jnp.float32)
            tv = t_ref[pl.ds(j * chunk_rows, chunk_rows), :].astype(jnp.float32)
            d = xv - tv
            if masked:
                row_ids = (row_block * tile_rows + j * chunk_rows
                           + lax.broadcasted_iota(jnp.int32, (chunk_rows, 1), 0))
                d = jnp.where(row_ids < valid_rows, d, 0.0)
            sq = d * d
            # Fold (chunk_rows, 128) onto the resident (8, 128) output block:
            # purely elementwise VPU adds, no cross-lane XLU work per step.
            part_ref[0] += jnp.sum(
                sq.reshape(chunk_rows // _SUBLANE, _SUBLANE, _LANE), axis=0)

    if apply_mask:
        # Gate the iota+compare+select path so only the boundary block (and
        # clamped duplicates) pay for it; all other steps take the fast path.
        needs_mask = (row_block + 1) * tile_rows > valid_rows

        @pl.when(needs_mask)
        def _():
            accumulate(True)

        @pl.when(jnp.logical_not(needs_mask))
        def _():
            accumulate(False)
    else:
        accumulate(False)


class ContentLoss:
    """Pallas-TPU port of the style-transfer ContentLoss module.

    forward(x) sets self.loss = mean((x - target)**2) (computed by a Pallas
    reduction kernel) and returns x unchanged (identity pass-through).
    Use outside jit if you rely on the self.loss attribute, like the original
    nn.Module.
    """

    def __init__(self, target, *, tile_rows=None, num_splits=None,
                 vmem_limit_bytes=None):
        target = lax.stop_gradient(target)           # .detach()
        self.shape = target.shape
        total = math.prod(target.shape) if target.shape else 1
        assert total > 0, "empty target"
        self.total = total

        d_tile, d_vmem, d_splits = _device_defaults()
        tile_rows = d_tile if tile_rows is None else tile_rows
        vmem_limit_bytes = d_vmem if vmem_limit_bytes is None else vmem_limit_bytes
        num_splits = d_splits if num_splits is None else num_splits

        # One-off target preprocessing (construction time, off the hot path):
        # flatten, pad to a multiple of 128 lanes only if needed, 2-D view.
        self._pad = (-total) % _LANE
        tf = target.reshape(-1)
        if self._pad:
            tf = jnp.pad(tf, (0, self._pad))
        m = (total + self._pad) // _LANE
        self._rows = m
        self.target2d = tf.reshape(m, _LANE)

        # Tiling (all plain Python ints -> static).
        tile = max(_SUBLANE, (min(tile_rows, m) // _SUBLANE) * _SUBLANE)
        n_blocks = (m + tile - 1) // tile
        if n_blocks < num_splits:          # tiny inputs: no duplicate split work
            num_splits = 1
        steps_per_split = (n_blocks + num_splits - 1) // num_splits

        if tile <= _CHUNK_ROWS_MAX:
            chunk = tile
        else:
            chunk = _CHUNK_ROWS_MAX
            while tile % chunk:            # always terminates at 8 (tile % 8 == 0)
                chunk -= _SUBLANE

        # Mask is only ever needed for the partial last block / clamped
        # duplicate blocks; otherwise it is compiled out entirely.
        apply_mask = (n_blocks * tile != m) or \
                     (steps_per_split * num_splits != n_blocks)

        def in_index_map(c, i):
            # Clamp so the DMA never reads past the array; duplicate reads are
            # fully masked inside the kernel (see kernel NOTE).
            return (jnp.minimum(c * steps_per_split + i, n_blocks - 1), 0)

        kernel = functools.partial(
            _content_loss_kernel,
            steps_per_split=steps_per_split,
            tile_rows=tile,
            chunk_rows=chunk,
            valid_rows=m,
            apply_mask=apply_mask,
        )

        itemsize = jnp.dtype(target.dtype).itemsize
        bytes_accessed = (2 * m * _LANE * itemsize
                          + num_splits * _SUBLANE * _LANE * 4)

        self._partials = pl.pallas_call(
            kernel,
            out_shape=jax.ShapeDtypeStruct(
                (num_splits, _SUBLANE, _LANE), jnp.float32),
            grid=(num_splits, steps_per_split),
            in_specs=[
                pl.BlockSpec((tile, _LANE), in_index_map),
                pl.BlockSpec((tile, _LANE), in_index_map),
            ],
            out_specs=pl.BlockSpec((1, _SUBLANE, _LANE), lambda c, i: (c, 0, 0)),
            compiler_params=pltpu.CompilerParams(
                # TODO(synk): on v7x verify plain "parallel" actually shards the
                # leading axis across the two TensorCores; switch that axis to
                # pltpu.CORE_PARALLEL if it does not.
                dimension_semantics=("parallel", "arbitrary"),
                vmem_limit_bytes=vmem_limit_bytes,
            ),
            cost_estimate=pl.CostEstimate(
                flops=3 * total, transcendentals=0,
                bytes_accessed=bytes_accessed),
        )

        self.loss = None

    def __call__(self, x):
        return self.forward(x)

    def forward(self, x):
        assert x.shape == self.shape, "x and target must have identical shapes"
        xf = x.reshape(-1)                      # free metadata reshape
        if self._pad:
            # Rare fallback: element count not a multiple of 128 (never the
            # case for typical conv feature maps).  This is the only path that
            # materializes a padded copy of x; target was padded once in init.
            xf = jnp.pad(xf, (0, self._pad))
        x2 = xf.reshape(self._rows, _LANE)

        partials = self._partials(x2, self.target2d)
        # Final cross-lane reduce + exact mean outside the kernel (reciprocal
        # of the exact element count computed in Python double precision).
        # Note: accumulation is a sequential f32 running sum per lane; for
        # >=1e8 elements expect ~1e-4 relative drift vs an f64 reference
        # (comparable to PyTorch's f32 mse_loss).
        self.loss = jnp.sum(partials) * (1.0 / float(self.total))
        return x                                # identity pass-through


if __name__ == "__main__":
    key = jax.random.PRNGKey(0)
    kx, kt = jax.random.split(key)

    # NCHW like the PyTorch module: batch=2, channels=4, spatial=16x16.
    x = jax.random.normal(kx, (2, 4, 16, 16), dtype=jnp.float32)
    target = jax.random.normal(kt, (2, 4, 16, 16), dtype=jnp.float32)

    content = ContentLoss(target)
    y = content(x)
    jax.block_until_ready((y, content.loss))

    ref_loss = jnp.mean((x - target) ** 2)
    assert jnp.allclose(y, x), "pass-through output mismatch"
    assert jnp.allclose(content.loss, ref_loss, rtol=1e-5, atol=1e-6), (
        content.loss, ref_loss)

    # Extra coverage: ragged element count (exercises the lane-pad fallback
    # plus the pl.when-gated boundary mask / partial last block).
    x_odd = jax.random.normal(kx, (3, 5, 7, 11), dtype=jnp.float32)
    t_odd = jax.random.normal(kt, (3, 5, 7, 11), dtype=jnp.float32)
    content_odd = ContentLoss(t_odd)
    _ = content_odd(x_odd)
    jax.block_until_ready(content_odd.loss)
    ref_odd = jnp.mean((x_odd - t_odd) ** 2)
    assert jnp.allclose(content_odd.loss, ref_odd, rtol=1e-5, atol=1e-6), (
        content_odd.loss, ref_odd)

    # Extra coverage: multi-step reduction grid (small tile override).
    content_small = ContentLoss(target, tile_rows=8)
    _ = content_small(x)
    jax.block_until_ready(content_small.loss)
    assert jnp.allclose(content_small.loss, ref_loss, rtol=1e-5, atol=1e-6), (
        content_small.loss, ref_loss)

    print("KERNEL_OK")
</pallas_src>

<mosaic_0001>
module attributes {stable_mosaic.version = 11 : i64} {
  func.func @_content_loss_kernel(%arg0: i32, %arg1: i32, %arg2: memref<16x128xf32, #tpu.memory_space<vmem>>, %arg3: memref<16x128xf32, #tpu.memory_space<vmem>>, %arg4: memref<1x8x128xf32, #tpu.memory_space<vmem>>) attributes {dimension_semantics = [#tpu.dimension_semantics<parallel>, #tpu.dimension_semantics<arbitrary>], iteration_bounds = array<i64: 1, 1>, scalar_prefetch = 0 : i64, scratch_operands = 0 : i64, tpu.core_type = #tpu.core_type<tc>, window_params = [{transform_indices = @transform_0, window_bounds = array<i64: 16, 128>}, {transform_indices = @transform_1, window_bounds = array<i64: 16, 128>}, {transform_indices = @transform_2, window_bounds = array<i64: 1, 8, 128>}]} {
    %c0_i32 = arith.constant 0 : i32
    %0 = arith.cmpi eq, %arg1, %c0_i32 : i32
    %1 = arith.extui %0 : i1 to i32
    %c0_i32_0 = arith.constant 0 : i32
    %2 = arith.cmpi ne, %1, %c0_i32_0 : i32
    scf.if %2 {
      %cst_10 = arith.constant 0.000000e+00 : f32
      %15 = vector.broadcast %cst_10 : f32 to vector<1x8x128xf32>
      %c0_11 = arith.constant 0 : index
      %c0_12 = arith.constant 0 : index
      %c0_13 = arith.constant 0 : index
      %16 = vector.load %arg4[%c0_11, %c0_12, %c0_13] : memref<1x8x128xf32, #tpu.memory_space<vmem>>, vector<1x8x128xf32>
      tpu.vector_store %arg4[%c0_11, %c0_12, %c0_13], %15 {strides = array<i32>} : memref<1x8x128xf32, #tpu.memory_space<vmem>>, vector<1x8x128xf32>,
    } else {
    }
    %c0 = arith.constant 0 : index
    %c0_1 = arith.constant 0 : index
    %3 = vector.load %arg2[%c0, %c0_1] : memref<16x128xf32, #tpu.memory_space<vmem>>, vector<16x128xf32>
    %c0_2 = arith.constant 0 : index
    %c0_3 = arith.constant 0 : index
    %4 = vector.load %arg3[%c0_2, %c0_3] : memref<16x128xf32, #tpu.memory_space<vmem>>, vector<16x128xf32>
    %5 = arith.subf %3, %4 : vector<16x128xf32>
    %6 = arith.mulf %5, %5 : vector<16x128xf32>
    %c0_4 = arith.constant 0 : index
    %c0_5 = arith.constant 0 : index
    %c0_6 = arith.constant 0 : index
    %7 = vector.load %arg4[%c0_4, %c0_5, %c0_6] : memref<1x8x128xf32, #tpu.memory_space<vmem>>, vector<1x8x128xf32>
    %8 = vector.shape_cast %7 : vector<1x8x128xf32> to vector<8x128xf32>
    %9 = vector.shape_cast %6 : vector<16x128xf32> to vector<2x8x128xf32>
    %cst = arith.constant dense<0.000000e+00> : vector<8x128xf32>
    %10 = vector.multi_reduction <add>, %9, %cst [0] : vector<2x8x128xf32> to vector<8x128xf32>
    %11 = arith.addf %8, %10 : vector<8x128xf32>
    %c0_7 = arith.constant 0 : index
    %c0_8 = arith.constant 0 : index
    %c0_9 = arith.constant 0 : index
    %12 = vector.load %arg4[%c0_7, %c0_8, %c0_9] : memref<1x8x128xf32, #tpu.memory_space<vmem>>, vector<1x8x128xf32>
    %13 = vector.shape_cast %12 : vector<1x8x128xf32> to vector<8x128xf32>
    %14 = vector.shape_cast %11 : vector<8x128xf32> to vector<1x8x128xf32>
    tpu.vector_store %arg4[%c0_7, %c0_8, %c0_9], %14 {strides = array<i32>} : memref<1x8x128xf32, #tpu.memory_space<vmem>>, vector<1x8x128xf32>,
    return
  }
  func.func @transform_0(%arg0: i32, %arg1: i32) -> (i32, i32) {
    %c1_i32 = arith.constant 1 : i32
    %0 = arith.muli %arg0, %c1_i32 : i32
    %1 = arith.addi %0, %arg1 : i32
    %c0_i32 = arith.constant 0 : i32
    %2 = arith.minsi %1, %c0_i32 : i32
    %c0_i32_0 = arith.constant 0 : i32
    %c0_i32_1 = arith.constant 0 : i32
    return %2, %c0_i32_0 : i32, i32
  }
  func.func @transform_1(%arg0: i32, %arg1: i32) -> (i32, i32) {
    %c1_i32 = arith.constant 1 : i32
    %0 = arith.muli %arg0, %c1_i32 : i32
    %1 = arith.addi %0, %arg1 : i32
    %c0_i32 = arith.constant 0 : i32
    %2 = arith.minsi %1, %c0_i32 : i32
    %c0_i32_0 = arith.constant 0 : i32
    %c0_i32_1 = arith.constant 0 : i32
    return %2, %c0_i32_0 : i32, i32
  }
  func.func @transform_2(%arg0: i32, %arg1: i32) -> (i32, i32, i32) {
    %c0_i32 = arith.constant 0 : i32
    %c0_i32_0 = arith.constant 0 : i32
    %c0_i32_1 = arith.constant 0 : i32
    return %arg0, %c0_i32, %c0_i32_0 : i32, i32, i32
  }
}

</mosaic_0001>

<bundles_post_ra>
// kernel: tpu_custom_call.1
= control target key start
LH: loop header
LB: loop body
LE: loop exit
PB: predicated region body
PF: predicated region fallthrough
CT: control target
= control target key end

     0   :  { %7 = vsyncpa [#allocation3], 0  ;;  %s216_s0 = inlined_call_operand.hbm [shape: f32[16,128], index: 0, kind: input, shape index: {}]   ;;  %s217_s1 = inlined_call_operand.hbm [shape: f32[16,128], index: 1, kind: input, shape index: {}]   ;;  %s218_s2 = inlined_call_operand.hbm [shape: f32[1,8,128], index: 2, kind: output, shape index: {}]  }
   0x1   :  { %8 = vsyncpa [#allocation6], 0 }
   0x2   :  { %9 = vsyncpa [#allocation4], 0  ;;  %s20_s11 = sshll.u32 %s216_s0, 4  ;;  %s187_s12 = smov [#allocation2]   ;;  %s21_s11 = int_to_ptr.hbm [resolvable:$true] %s20_s11 }
   0x3   :  { %s22_s13 = sshll.u32 %s187_s12, 4  ;;  %s39_s16 = sshll.u32 %s217_s1, 4  ;;  %s23_s13 = int_to_ptr.vmem [resolvable:$true] %s22_s13  ;;  %s40_s16 = int_to_ptr.hbm [resolvable:$true] %s39_s16 }
   0x4   :  { %s188_s17 = smov 128   ;;  %s189_s18 = smov 8  }
   0x5   :  { %28 = dma.hbm_to_vmem [thread:$0]  %s21_s11, 256, %s23_s13, [#allocation3], %s188_s17, %s188_s17, %s189_s18  }
   0x6   :  { %s190_s19 = smov [#allocation5]  }
   0x7   :  { %s41_s20 = sshll.u32 %s190_s19, 4  ;;  %s42_s20 = int_to_ptr.vmem [resolvable:$true] %s41_s20 }
   0x8   :  { %47 = dma.hbm_to_vmem [thread:$0]  %s40_s16, 256, %s42_s20, [#allocation6], %s188_s17, %s188_s17, %s189_s18  }
   0x9   :  { %181 = dma.done.wait [#allocation3], 256  }
   0xa   :  { %182 = vsyncadd [#allocation3], 4294967040 }
   0xb   :  { %183 = dma.done.wait [#allocation6], 256  }
   0xc   :  { %184 = vsyncadd [#allocation6], 4294967040  ;;  %v69_v0 = vld [vmem:[#allocation2] sm:$0xff]  ;;  %v70_v1 = vld [vmem:[#allocation2 + $0x8] sm:$0xff]  ;;  %s191_s0 = smov [#allocation7]   ;;  %s88_s23 = sshll.u32 %s218_s2, 4  ;;  %s89_s23 = int_to_ptr.hbm [resolvable:$true] %s88_s23 }
   0xd   :  { %v71_v2 = vld [vmem:[#allocation5] sm:$0xff]  ;;  %v72_v3 = vld [vmem:[#allocation5 + $0x8] sm:$0xff]  ;;  %s86_s1 = sshll.u32 %s191_s0, 4  ;;  %s87_s1 = int_to_ptr.vmem [resolvable:$true] %s86_s1 }
   0xe   :  { %v73_v4 = vsub.f32 %v69_v0, %v71_v2  ;;  %v74_v5 = vsub.f32 %v70_v1, %v72_v3 }
  0x10   :  { %v75_v6 = vmul.f32 %v73_v4, %v73_v4  ;;  %v76_v7 = vmul.f32 %v74_v5, %v74_v5 }
  0x12   :  { %v78_v8 = vadd.f32 %v76_v7, %v75_v6 }
  0x14   :  { %80 = vst [vmem:[#allocation7] sm:$0xff] %v78_v8 }
  0x15   :  { %91 = dma.vmem_to_hbm [thread:$0]  %s87_s1, 128, %s89_s23, [#allocation4]  }
  0x16   :  { %185 = dma.done.wait [#allocation4], 128  }
  0x17   :  { %186 = vsyncadd [#allocation4], 4294967168 }
  0x18   :  { %96 = vsyncpa [#allocation3], 1 }
  0x19   :  { %97 = vsyncpa [#allocation6], 1 }
  0x1a   :  { %98 = vsyncpa [#allocation4], 1 }

</bundles_post_ra>
